<compile_context>
chip_gen: v7x
topology: tpu7x:2x2x1
jax: 0.10.0
libtpu: 0.0.40
codegen_flags: <defaults>
</compile_context>

<pallas_src>
import functools

import jax
import jax.numpy as jnp
from jax import lax
from jax.experimental import pallas as pl
from jax.experimental.pallas import tpu as pltpu

_LANE = 128
_MAX_UNROLL_CHUNKS = 64          # bound the static unroll of the per-tile VPU adds


def _round_up(x, m):
    return ((x + m - 1) // m) * m


def _tpu_vmem_bytes():
    """Trace-time VMEM capacity query with a safe fallback."""
    try:
        info = pltpu.get_tpu_info()
        cap = getattr(info, "vmem_capacity_bytes", None)
        if cap:
            return int(cap)
    except Exception:
        pass
    return 128 << 20  # v5e / v6e default


def _pooled_sum_kernel(x_ref, o_ref, acc_ref, *, hw, tile_hw, tiles_per_part,
                       total_tiles, padded):
    # x_ref:   (C_in, tile_hw)   one spatial tile of one batch element / parallel part
    # o_ref:   (C_in, 1)         raw spatial SUM for this (batch, part)
    # acc_ref: (C_in, 128) f32   lane-blocked running sum (VMEM scratch)
    p = pl.program_id(1)
    t = pl.program_id(2)
    n_chunks = tile_hw // _LANE
    cin = acc_ref.shape[0]

    @pl.when(t == 0)
    def _init():
        acc_ref[...] = jnp.zeros_like(acc_ref)

    def _accum_full():
        # Lane-blocked VPU accumulation; bf16 chunks promote per-add (no full-tile cast).
        total = x_ref[:, 0:_LANE].astype(jnp.float32)
        for k in range(1, n_chunks):
            total = total + x_ref[:, k * _LANE:(k + 1) * _LANE].astype(jnp.float32)
        acc_ref[...] += total

    if padded:
        def _accum_masked():
            # Only ever runs for the globally-last spatial tile -> all offsets static.
            start = (total_tiles - 1) * tile_hw
            lane = lax.broadcasted_iota(jnp.int32, (1, _LANE), 1)
            total = jnp.zeros((cin, _LANE), jnp.float32)
            for k in range(n_chunks):
                valid = hw - start - k * _LANE          # static Python int
                if valid <= 0:
                    continue                            # fully out-of-range chunk
                chunk = x_ref[:, k * _LANE:(k + 1) * _LANE].astype(jnp.float32)
                if valid < _LANE:
                    chunk = jnp.where(lane < valid, chunk, 0.0)
                total = total + chunk
            acc_ref[...] += total

        is_last_global = (p * tiles_per_part + t) == (total_tiles - 1)

        @pl.when(jnp.logical_not(is_last_global))
        def _():
            _accum_full()

        @pl.when(is_last_global)
        def _():
            _accum_masked()
    else:
        _accum_full()

    @pl.when(t == tiles_per_part - 1)
    def _finalize():
        # Single cross-lane reduce per (n, p); output stays a tiny (C_in, 1) column.
        o_ref[...] = jnp.sum(acc_ref[...], axis=1, keepdims=True).astype(o_ref.dtype)


def aspp_pooling(x_nchw, weight, *, tile_hw=None):
    """x_nchw: (N, C_in, H, W); weight: (C_out, C_in, 1, 1) -> (N, C_out, H, W)."""
    N, Cin, H, W = x_nchw.shape
    Cout = weight.shape[0]
    HW = H * W
    itemsize = jnp.dtype(x_nchw.dtype).itemsize

    x_flat = x_nchw.reshape(N, Cin, HW)      # glue reshape (plain JAX)
    w2d = weight.reshape(Cout, Cin)          # squeeze the 1x1 kernel dims

    # ---- generation-aware tiling / VMEM policy -------------------------------------
    vmem_cap = _tpu_vmem_bytes()
    if vmem_cap <= (64 << 20):               # v7x-class: 64 MiB VMEM, 3.2 TB/s HBM
        block_bytes = 6 << 20
        limit_cap = 48 << 20
    else:                                     # v5e / v6e: 128 MiB VMEM
        block_bytes = 12 << 20
        limit_cap = 96 << 20

    hw_pad = _round_up(HW, _LANE)
    if tile_hw is None:
        budget_lanes = (block_bytes // max(1, Cin * itemsize)) // _LANE * _LANE
        tile_hw = min(max(512, budget_lanes), _MAX_UNROLL_CHUNKS * _LANE, hw_pad)
        tile_hw = max(_LANE, tile_hw // _LANE * _LANE)
    else:
        tile_hw = max(_LANE, min(_round_up(tile_hw, _LANE), hw_pad))

    total_tiles = pl.cdiv(HW, tile_hw)
    padded = (total_tiles * tile_hw) != HW

    # Two-way spatial split (second "parallel" axis) so both v7x TensorCores get work
    # even when N == 1; a no-op on single-TC chips and skipped when tile count is odd.
    P = 2 if (total_tiles >= 2 and total_tiles % 2 == 0) else 1
    tiles_per_part = total_tiles // P

    kernel = functools.partial(
        _pooled_sum_kernel, hw=HW, tile_hw=tile_hw, tiles_per_part=tiles_per_part,
        total_tiles=total_tiles, padded=padded)

    acc_bytes = _round_up(Cin, 8) * _LANE * 4
    out_bytes = 2 * _round_up(Cin, 8) * _LANE * 4
    vmem_est = 2 * Cin * tile_hw * itemsize + acc_bytes + out_bytes
    vmem_limit = int(min(max(2 * vmem_est, 16 << 20), limit_cap))

    cost = pl.CostEstimate(
        flops=int(N * Cin * HW),
        transcendentals=0,
        bytes_accessed=int(N * Cin * HW * itemsize + N * P * Cin * 4),
    )

    pooled_sum = pl.pallas_call(
        kernel,
        out_shape=jax.ShapeDtypeStruct((N, P, Cin, 1), jnp.float32),
        grid_spec=pltpu.PrefetchScalarGridSpec(
            num_scalar_prefetch=0,
            grid=(N, P, tiles_per_part),      # spatial reduce axis last
            in_specs=[
                pl.BlockSpec((pl.Squeezed(), Cin, tile_hw),
                             lambda n, p, t: (n, 0, p * tiles_per_part + t)),
            ],
            out_specs=pl.BlockSpec((pl.Squeezed(), pl.Squeezed(), Cin, 1),
                                   lambda n, p, t: (n, p, 0, 0)),
            scratch_shapes=[pltpu.VMEM((Cin, _LANE), jnp.float32)],
        ),
        compiler_params=pltpu.CompilerParams(
            dimension_semantics=("parallel", "parallel", "arbitrary"),
            vmem_limit_bytes=vmem_limit),
        cost_estimate=cost,
    )(x_flat)

    # Combine parallel halves and divide by the TRUE H*W; 1x1 conv (no bias) + ReLU
    # and the value-redundant broadcast are trivial and left to XLA so downstream
    # ASPP consumers can fuse them.
    pooled = pooled_sum.sum(axis=1)[..., 0] * (1.0 / HW)                 # (N, C_in)
    y = jnp.maximum(pooled @ w2d.astype(jnp.float32).T, 0.0)            # (N, C_out)
    out = jnp.broadcast_to(y[:, :, None, None], (N, Cout, H, W))
    return out.astype(x_nchw.dtype)


def aspp_pooling_ref(x_nchw, weight):
    """Pure-JAX reference mirroring the PyTorch ASPPPooling forward."""
    pooled = jnp.mean(x_nchw.astype(jnp.float32), axis=(2, 3))           # (N, C_in)
    w2d = weight.reshape(weight.shape[0], weight.shape[1]).astype(jnp.float32)
    y = jnp.maximum(pooled @ w2d.T, 0.0)                                  # (N, C_out)
    N, _, H, W = x_nchw.shape
    return jnp.broadcast_to(y[:, :, None, None],
                            (N, weight.shape[0], H, W)).astype(x_nchw.dtype)


def _check(out, ref, atol, rtol):
    assert out.shape == ref.shape
    assert jnp.allclose(out.astype(jnp.float32), ref.astype(jnp.float32),
                        atol=atol, rtol=rtol)


if __name__ == "__main__":
    key = jax.random.PRNGKey(0)
    kx1, kx2, kx3, kw = jax.random.split(key, 4)

    N, Cin, Cout = 2, 4, 8
    # deterministic synthetic conv weight (Conv2d(in_ch, out_ch, 1, bias=False))
    weight = (jax.random.normal(kw, (Cout, Cin, 1, 1), dtype=jnp.float32)
              * (1.0 / jnp.sqrt(Cin)))

    # Case 1: H*W = 256 (lane-aligned, single spatial tile, no mask).
    x1 = jax.random.normal(kx1, (N, Cin, 16, 16), dtype=jnp.float32)
    out1 = jax.block_until_ready(aspp_pooling(x1, weight))
    _check(out1, aspp_pooling_ref(x1, weight), atol=1e-5, rtol=1e-5)

    # Case 2: H*W = 576 -> single padded 640-lane tile (partial + skipped chunks).
    x2 = jax.random.normal(kx2, (N, Cin, 24, 24), dtype=jnp.float32)
    out2 = jax.block_until_ready(aspp_pooling(x2, weight))
    _check(out2, aspp_pooling_ref(x2, weight), atol=1e-5, rtol=1e-5)

    # Case 3: H*W = 900, forced 128-lane tiles -> 8 tiles, 2-way parallel spatial
    # split (4 tiles per half) + masked ragged last tile.
    x3 = jax.random.normal(kx3, (N, Cin, 30, 30), dtype=jnp.float32)
    out3 = jax.block_until_ready(aspp_pooling(x3, weight, tile_hw=128))
    _check(out3, aspp_pooling_ref(x3, weight), atol=1e-5, rtol=1e-5)

    # Case 4: bf16 input path (chunk adds promote to f32, no full-tile upcast).
    x4 = x1.astype(jnp.bfloat16)
    out4 = jax.block_until_ready(aspp_pooling(x4, weight))
    _check(out4, aspp_pooling_ref(x4, weight), atol=2e-2, rtol=2e-2)

    print("KERNEL_OK")
</pallas_src>

<mosaic_0001>
module attributes {stable_mosaic.version = 11 : i64} {
  func.func @_pooled_sum_kernel(%arg0: i32, %arg1: i32, %arg2: i32, %arg3: memref<1x4x256xf32, #tpu.memory_space<vmem>>, %arg4: memref<1x1x4x1xf32, #tpu.memory_space<vmem>>, %arg5: memref<4x128xf32, #tpu.memory_space<vmem>>) attributes {dimension_semantics = [#tpu.dimension_semantics<parallel>, #tpu.dimension_semantics<parallel>, #tpu.dimension_semantics<arbitrary>], iteration_bounds = array<i64: 2, 1, 1>, scalar_prefetch = 0 : i64, scratch_operands = 1 : i64, tpu.core_type = #tpu.core_type<tc>, window_params = [{transform_indices = @transform_0, window_bounds = array<i64: 1, 4, 256>}, {transform_indices = @transform_1, window_bounds = array<i64: 1, 1, 4, 1>}]} {
    %c0_i32 = arith.constant 0 : i32
    %0 = arith.cmpi eq, %arg2, %c0_i32 : i32
    %1 = arith.extui %0 : i1 to i32
    %c0_i32_0 = arith.constant 0 : i32
    %2 = arith.cmpi ne, %1, %c0_i32_0 : i32
    scf.if %2 {
      %cst = arith.constant 0.000000e+00 : f32
      %14 = vector.broadcast %cst : f32 to vector<4x128xf32>
      %c0_11 = arith.constant 0 : index
      %c0_12 = arith.constant 0 : index
      %15 = vector.load %arg5[%c0_11, %c0_12] : memref<4x128xf32, #tpu.memory_space<vmem>>, vector<4x128xf32>
      tpu.vector_store %arg5[%c0_11, %c0_12], %14 {strides = array<i32>} : memref<4x128xf32, #tpu.memory_space<vmem>>, vector<4x128xf32>,
    } else {
    }
    %c0 = arith.constant 0 : index
    %c0_1 = arith.constant 0 : index
    %c0_2 = arith.constant 0 : index
    %3 = vector.load %arg3[%c0, %c0_1, %c0_2] : memref<1x4x256xf32, #tpu.memory_space<vmem>>, vector<1x4x128xf32>
    %4 = vector.shape_cast %3 : vector<1x4x128xf32> to vector<4x128xf32>
    %c0_3 = arith.constant 0 : index
    %c0_4 = arith.constant 0 : index
    %c128 = arith.constant 128 : index
    %5 = vector.load %arg3[%c0_3, %c0_4, %c128] : memref<1x4x256xf32, #tpu.memory_space<vmem>>, vector<1x4x128xf32>
    %6 = vector.shape_cast %5 : vector<1x4x128xf32> to vector<4x128xf32>
    %7 = arith.addf %4, %6 : vector<4x128xf32>
    %c0_5 = arith.constant 0 : index
    %c0_6 = arith.constant 0 : index
    %8 = vector.load %arg5[%c0_5, %c0_6] : memref<4x128xf32, #tpu.memory_space<vmem>>, vector<4x128xf32>
    %9 = arith.addf %8, %7 : vector<4x128xf32>
    %c0_7 = arith.constant 0 : index
    %c0_8 = arith.constant 0 : index
    %10 = vector.load %arg5[%c0_7, %c0_8] : memref<4x128xf32, #tpu.memory_space<vmem>>, vector<4x128xf32>
    tpu.vector_store %arg5[%c0_7, %c0_8], %9 {strides = array<i32>} : memref<4x128xf32, #tpu.memory_space<vmem>>, vector<4x128xf32>,
    %c0_i32_9 = arith.constant 0 : i32
    %11 = arith.cmpi eq, %arg2, %c0_i32_9 : i32
    %12 = arith.extui %11 : i1 to i32
    %c0_i32_10 = arith.constant 0 : i32
    %13 = arith.cmpi ne, %12, %c0_i32_10 : i32
    scf.if %13 {
      %c0_11 = arith.constant 0 : index
      %c0_12 = arith.constant 0 : index
      %14 = vector.load %arg5[%c0_11, %c0_12] : memref<4x128xf32, #tpu.memory_space<vmem>>, vector<4x128xf32>
      %cst = arith.constant dense<0.000000e+00> : vector<4xf32>
      %15 = vector.multi_reduction <add>, %14, %cst [1] : vector<4x128xf32> to vector<4xf32>
      %16 = vector.shape_cast %15 : vector<4xf32> to vector<4x1xf32>
      %c0_13 = arith.constant 0 : index
      %c0_14 = arith.constant 0 : index
      %c0_15 = arith.constant 0 : index
      %c0_16 = arith.constant 0 : index
      %17 = vector.load %arg4[%c0_13, %c0_14, %c0_15, %c0_16] : memref<1x1x4x1xf32, #tpu.memory_space<vmem>>, vector<1x1x4x1xf32>
      %18 = vector.shape_cast %17 : vector<1x1x4x1xf32> to vector<4x1xf32>
      %19 = vector.shape_cast %16 : vector<4x1xf32> to vector<1x1x4x1xf32>
      tpu.vector_store %arg4[%c0_13, %c0_14, %c0_15, %c0_16], %19 {strides = array<i32>} : memref<1x1x4x1xf32, #tpu.memory_space<vmem>>, vector<1x1x4x1xf32>,
    } else {
    }
    return
  }
  func.func @transform_0(%arg0: i32, %arg1: i32, %arg2: i32) -> (i32, i32, i32) {
    %c1_i32 = arith.constant 1 : i32
    %0 = arith.muli %arg1, %c1_i32 : i32
    %1 = arith.addi %0, %arg2 : i32
    %c0_i32 = arith.constant 0 : i32
    %c0_i32_0 = arith.constant 0 : i32
    return %arg0, %c0_i32, %1 : i32, i32, i32
  }
  func.func @transform_1(%arg0: i32, %arg1: i32, %arg2: i32) -> (i32, i32, i32, i32) {
    %c0_i32 = arith.constant 0 : i32
    %c0_i32_0 = arith.constant 0 : i32
    %c0_i32_1 = arith.constant 0 : i32
    return %arg0, %arg1, %c0_i32, %c0_i32_0 : i32, i32, i32, i32
  }
}

</mosaic_0001>

<bundles_post_ra>
// kernel: tpu_custom_call.1
= control target key start
LH: loop header
LB: loop body
LE: loop exit
PB: predicated region body
PF: predicated region fallthrough
CT: control target
= control target key end

     0   :  { %6 = vsyncpa [#allocation4], 0  ;;  %s568_s0 = inlined_call_operand.hbm [shape: f32[2,4,256], index: 0, kind: input, shape index: {}]   ;;  %s569_s1 = inlined_call_operand.vmem [shape: f32[2,1,4,1], index: 1, kind: output, shape index: {}]  }
   0x1   :  { %8 = vsyncpa [#allocation4 + $0x1], 0  ;;  %s443_s6 = smov 0   ;;  %s445_s7 = smov 0  }
   0x2   :  { %s447_s8 = smov 0   ;;  %s449_s9 = smov 0  }
   0x3   :  { %s451_s10 = smov 0   ;;  %s453_s11 = smov 0  }
   0x4 LB: > { %s280_s12 = sadd.s32 4294967295, %s429_s11   ;;  %s33_s13 = sadd.s32 1, %s425_s10  ;;  %s429_s11 = sphi %s453_s11, %s14_s11   ;;  %s425_s10 = sphi %s451_s10, %s579_s10   ;;  %s421_s9 = sphi %s449_s9, %s578_s9   ;;  %s417_s8 = sphi %s447_s8, %s577_s8   ;;  %s413_s7 = sphi %s445_s7, %s576_s7   ;;  %s409_s6 = sphi %s443_s6, %s575_s6  }
   0x5   : > { %p35_p0 = scmp.ge.s32.totalorder %s33_s13, 2  ;;  %s44_s14 = sadd.s32 1, %s417_s8 }
   0x6   : > { %p51_p1 = scmp.ne.s32.totalorder %s417_s8, %s413_s7  ;;  %p52_p2 = scmp.eq.s32.totalorder %s429_s11, 0 }
   0x7   : > { %s581_s13 = smov (%p35_p0, %s33_s13), 0  ;;  %p57_p4 = scmp.ne.s32.totalorder %s413_s7, %s409_s6 }
   0x8   : > { %p479_p3 = por %p52_p2, %p51_p1  ;;  %s39_s16 = ssub.s32 %s425_s10, %s581_s13 }
   0x9   : > { %p58_p5 = scmp.eq.s32.totalorder %s280_s12, 0  ;;  %p42_p6 = scmp.eq.s32.totalorder %s39_s16, 0 }
   0xa   : > { %p299_p8 = scmp.lt.s32.totalorder %s429_s11, 2  ;;  %s109_s19 = sand.u32 1, %s417_s8  }
   0xb   : > { %p486_p7 = por %p58_p5, %p57_p4  ;;  %s292_s20 = sshll.u32 %s425_s10, 7 }
   0xc   : > { %s492_s18 = scalar_select %p42_p6, %s417_s8, %s44_s14  }
   0xd   : > { %s284_s21 = sshll.u32 %s109_s19, 3  ;;  %s499_s24 = scalar_lea.hbm %s568_s0, %s292_s20 }
   0xe   : > { %s113_s25 = scalar_lea.vmem [#allocation3], %s284_s21  ;;  %p503_p9 = pnand %p299_p8, %p479_p3 }
   0xf   : > { %s124_s26 = sshll.u32 %s113_s25, 4  ;;  %s110_s28 = scalar_lea.sflag [#allocation4], %s109_s19  ;;  %s507_s26 = int_to_ptr.vmem [resolvable:$true] %s124_s26 }
  0x10   : > { %s349_s29 = scalar_lea.hbm %s499_s24, 128  ;;  %p351_p13 = pneg %p503_p9 }
  0x11   : > { %p350_p12 = scmp.ne.s32.totalorder %s499_s24, %s349_s29  ;;  %s354_s3 = scalar_lea.hbm %s568_s0, 256 }
  0x12   : > { %p355_p2 = scmp.lt.u32.totalorder %s499_s24, %s568_s0  ;;  %p356_p3 = scmp.lt.u32.totalorder %s354_s3, %s349_s29 }
  0x13   : > { %p352_p0 = pnand %p351_p13, %p350_p12  ;;  %p358_p5 = scmp.lt.u32.totalorder %s349_s29, %s499_s24 }
  0x14   : > { %p357_p4 = por %p356_p3, %p355_p2 }
  0x15   : > { %p353_p1 = pneg %p352_p0 }
  0x16   : > { %p359_p6 = por %p358_p5, %p357_p4 }
  0x18   : > { %p360_p8 = pnand %p359_p6, %p353_p1 }
  0x1a   : > { %363 = shalt.err (!%p360_p8)
}
  0x1b   : > { %s364_s6 = scalar_lea.vmem %s507_s26, 128  ;;  %s431_s12 = smov [#allocation3]  }
  0x1c   : > { %p365_p12 = scmp.ne.s32.totalorder %s507_s26, %s364_s6  ;;  %s369_s14 = sshll.u32 %s431_s12, 4  ;;  %s370_s14 = int_to_ptr.vmem [resolvable:$false] %s369_s14 }
  0x1d   : > { %s371_s15 = scalar_lea.vmem %s370_s14, 256  ;;  %p372_p11 = scmp.lt.s32.totalorder %s507_s26, %s370_s14 }
  0x1e   : > { %p367_p0 = pnand %p365_p12, %p351_p13  ;;  %p373_p2 = scmp.lt.s32.totalorder %s371_s15, %s364_s6 }
  0x20   : > { %p368_p10 = pneg %p367_p0  ;;  %p374_p3 = por %p373_p2, %p372_p11 }
  0x22   : > { %p375_p4 = pnand %p374_p3, %p368_p10 }
  0x24   : > { %378 = shalt.err (!%p375_p4)
}
  0x25   : > { %298 = dma.hbm_to_vmem [thread:$0]  (!%p503_p9), %s499_s24, 128, %s507_s26, %s110_s28  }
  0x26   : > { %p573_p1 = scmp.lt.s32.totalorder %s429_s11, 3  ;;  %p574_p5 = scmp.ge.s32.totalorder %s429_s11, 1 }
  0x28   : > { %p130_p13 = pnand %p574_p5, %p573_p1 }
  0x29   : > { %s135_s16 = sand.u32 (!%p130_p13), 1, %s413_s7  }
  0x2a   : > { %133 = sbr.rel (%p130_p13) target bundleno = 213 (0xd5), region = 24  ;;  %s288_s19 = sshll.u32 (!%p130_p13), %s135_s16, 3 }
  0x2b   : > { %s136_s20 = scalar_lea.sflag (!%p130_p13), [#allocation4], %s135_s16  ;;  %s139_s21 = scalar_lea.vmem (!%p130_p13), [#allocation3], %s288_s19 }
  0x31   : > { %404 = dma.done.wait (%p486_p7), %s136_s20, 128  }
  0x32   : > { %406 = vsyncadd (%p486_p7), %s136_s20, 4294967168  ;;  %v432_v0 = vmov 0.0   ;;  %v174_v1 = vld [vmem:[%s139_s21] sm:$0xf]  ;;  %v175_v2 = vld [vmem:[%s139_s21 + $0x4] sm:$0xf] }
  0x33   : > { %173 = vst [vmem:[#allocation2] sm:$0xf] %v432_v0  ;;  %v176_v3 = vadd.f32 %v175_v2, %v174_v1  ;;  %vm184_vm0 = vcmask 1043456   ;;  %p162_p9 = scmp.lt.s32.totalorder %s421_s9, 1  ;;  %vm188_vm1 = vcmask 3072  }
  0x35   : > { %s583_s9 = smov (!%p162_p9, %s421_s9), 1 }
  0x36   : > { %s289_s22 = sshll.u32 %s583_s9, 2 }
  0x37   : > { %s168_s24 = scalar_lea.vmem %s569_s1, %s289_s22 }
  0x3a   : > { %v177_v4 = vld [vmem:[#allocation2] sm:$0xf] }
  0x3b   : > { %v178_v5 = vadd.f32 %v177_v4, %v176_v3 }
  0x3d   : > { %179 = vst [vmem:[#allocation2] sm:$0xf] %v178_v5 }
  0x44   : > { %v183_v6 = vld [vmem:[#allocation2] sm:$0xf] }
  0x45   : > { %v185_v7 = vsel %vm184_vm0, %v183_v6, 0.0 }
  0x46   : > { %186 = vadd.xlane.f32.xlu0 %v185_v7 }
  0xd3   : > { %v187_v8 = vpop.xlane.xlu0 %186 }
  0xd4   : > { %189 = vst.msk [vmem:[%s168_s24] sm:$0xf] %vm188_vm1, %v187_v8 }
  0xd5 PF: > { %s14_s11 = sadd.s32 1, %s429_s11   ;;  %s575_s6 = smov %s413_s7 }
  0xd6   : > { %p11_p7 = scmp.ge.s32.totalorder %s14_s11, 4   ;;  %s576_s7 = smov %s417_s8 }
  0xd7   : > { %s577_s8 = smov %s492_s18  ;;  %s578_s9 = smov %s425_s10 }
  0xd8   : > { %s579_s10 = smov %s581_s13  ;;  %13 = sbr.rel (!%p11_p7) target bundleno = 4 (0x4), region = 72 }
  0xdf   :  { %215 = vsyncpa [#allocation4], 1 }
  0xe0   :  { %217 = vsyncpa [#allocation4 + $0x1], 1 }

</bundles_post_ra>
